<compile_context>
chip_gen: v5e
topology: v5e:2x2
jax: 0.10.0
libtpu: 0.0.40
codegen_flags: <defaults>
</compile_context>

<pallas_src>
import functools

import jax
import jax.numpy as jnp
from jax import lax
from jax.experimental import pallas as pl
from jax.experimental.pallas import tpu as pltpu

IN_FEATURES = 175
H1, H2, H3, OUT = 300, 200, 100, 20
BN_EPS = 1e-5

# Lane-padded (multiple-of-128) feature dims.
F_P, H1_P, H2_P, H3_P, OUT_P = 256, 384, 256, 128, 128


def _round_up(n, m):
    return ((n + m - 1) // m) * m


def _pad_to(a, target, axis):
    pad = target - a.shape[axis]
    if pad == 0:
        return a
    widths = [(0, 0)] * a.ndim
    widths[axis] = (0, pad)
    return jnp.pad(a, widths)


def _mlp_kernel(x_ref,
                w1_ref, b1_ref,
                w2_ref, b2_ref,
                w3_ref, b3_ref,
                w4_ref, b4_ref,
                o_ref):
    # x_ref: (TB, F_P) bf16; weights bf16; biases / output f32.
    x = x_ref[...]

    # Linear(175->300) with BatchNorm folded in (eval mode) + ReLU
    h = jnp.dot(x, w1_ref[...], preferred_element_type=jnp.float32) + b1_ref[...]
    h = jnp.maximum(h, 0.0)

    # Linear(300->200) + ReLU   (Dropout(0.3) is identity in eval mode)
    h = jnp.dot(h.astype(jnp.bfloat16), w2_ref[...],
                preferred_element_type=jnp.float32) + b2_ref[...]
    h = jnp.maximum(h, 0.0)

    # Linear(200->100) + ReLU
    h = jnp.dot(h.astype(jnp.bfloat16), w3_ref[...],
                preferred_element_type=jnp.float32) + b3_ref[...]
    h = jnp.maximum(h, 0.0)

    # Linear(100->20)  (lane-padded to 128; extra lanes are zero and sliced off outside)
    o_ref[...] = jnp.dot(h.astype(jnp.bfloat16), w4_ref[...],
                         preferred_element_type=jnp.float32) + b4_ref[...]


def _prepare_params(p):
    """Fold eval-mode BatchNorm into layer 1, zero-pad all dims to lane multiples,
    cast weight matrices to bf16 (biases stay f32)."""
    scale = p["gamma"] * lax.rsqrt(p["rvar"] + BN_EPS)          # (1, H1)
    w1 = p["w1"] * scale                                        # (175, 300)
    b1 = (p["b1"] - p["rmean"]) * scale + p["beta"]             # (1, 300)

    def pad_w(w, rows, cols):
        return _pad_to(_pad_to(w, rows, 0), cols, 1).astype(jnp.bfloat16)

    def pad_b(b, cols):
        return _pad_to(b, cols, 1).astype(jnp.float32)

    return (
        pad_w(w1, F_P, H1_P),        pad_b(b1, H1_P),
        pad_w(p["w2"], H1_P, H2_P),  pad_b(p["b2"], H2_P),
        pad_w(p["w3"], H2_P, H3_P),  pad_b(p["b3"], H3_P),
        pad_w(p["w4"], H3_P, OUT_P), pad_b(p["b4"], OUT_P),
    )


@functools.partial(jax.jit, static_argnames=("tile_b",))
def _forward_impl(x, params, tile_b):
    B = x.shape[0]
    Bp = _round_up(B, tile_b)

    # Pad input: batch -> multiple of tile, features 175 -> 256; cast matmul operand to bf16.
    xp = _pad_to(_pad_to(x, F_P, 1), Bp, 0).astype(jnp.bfloat16)

    plist = _prepare_params(params)

    def full_spec(shape):
        return pl.BlockSpec(shape, lambda i: tuple(0 for _ in shape))

    in_specs = [pl.BlockSpec((tile_b, F_P), lambda i: (i, 0))]
    in_specs += [full_spec(p.shape) for p in plist]

    out_padded = pl.pallas_call(
        _mlp_kernel,
        out_shape=jax.ShapeDtypeStruct((Bp, OUT_P), jnp.float32),
        grid_spec=pltpu.PrefetchScalarGridSpec(
            num_scalar_prefetch=0,
            grid=(Bp // tile_b,),
            in_specs=in_specs,
            out_specs=pl.BlockSpec((tile_b, OUT_P), lambda i: (i, 0)),
        ),
        compiler_params=pltpu.CompilerParams(
            dimension_semantics=("parallel",),
        ),
    )(xp, *plist)

    return out_padded[:B, :OUT]


def author_id_forward(x, params, tile_b=512):
    """x: [B, 175] float32. Returns logits [B, 20] float32.

    tile_b is the batch tile (sweep 256/512/1024 on real workloads); for small
    batches we collapse to a single block so no grid-step overhead is paid.
    """
    B = x.shape[0]
    tb = tile_b if B >= tile_b else _round_up(B, 8)
    return _forward_impl(x, params, tb)


def init_params(key):
    """Deterministic parameter init mimicking torch.nn.Linear default
    (uniform(-1/sqrt(fan_in), 1/sqrt(fan_in))) and fresh BatchNorm1d state."""
    def linear(key, fan_in, fan_out):
        kw, kb = jax.random.split(key)
        bound = 1.0 / jnp.sqrt(fan_in)
        w = jax.random.uniform(kw, (fan_in, fan_out), jnp.float32, -bound, bound)
        b = jax.random.uniform(kb, (1, fan_out), jnp.float32, -bound, bound)
        return w, b

    k1, k2, k3, k4 = jax.random.split(key, 4)
    w1, b1 = linear(k1, IN_FEATURES, H1)
    w2, b2 = linear(k2, H1, H2)
    w3, b3 = linear(k3, H2, H3)
    w4, b4 = linear(k4, H3, OUT)
    return {
        "w1": w1, "b1": b1,
        "gamma": jnp.ones((1, H1), jnp.float32),
        "beta": jnp.zeros((1, H1), jnp.float32),
        "rmean": jnp.zeros((1, H1), jnp.float32),
        "rvar": jnp.ones((1, H1), jnp.float32),
        "w2": w2, "b2": b2,
        "w3": w3, "b3": b3,
        "w4": w4, "b4": b4,
    }


def reference_forward(x, p):
    """Pure-JAX f32 reference (unfolded BN, unpadded) for correctness check."""
    h = x @ p["w1"] + p["b1"]
    h = (h - p["rmean"]) * (p["gamma"] / jnp.sqrt(p["rvar"] + BN_EPS)) + p["beta"]
    h = jnp.maximum(h, 0.0)
    h = jnp.maximum(h @ p["w2"] + p["b2"], 0.0)
    h = jnp.maximum(h @ p["w3"] + p["b3"], 0.0)
    return h @ p["w4"] + p["b4"]


if __name__ == "__main__":
    key = jax.random.PRNGKey(0)
    k_param, k_x = jax.random.split(key)

    B = 16  # small test batch (arbitrary B is supported via padding)
    params = init_params(k_param)
    x = jax.random.normal(k_x, (B, IN_FEATURES), dtype=jnp.float32)

    out = author_id_forward(x, params)
    out = jax.block_until_ready(out)

    ref = reference_forward(x, params)
    assert out.shape == (B, OUT), out.shape
    # bf16 matmul operands with f32 accumulation -> relaxed tolerance vs f32 reference.
    assert jnp.allclose(out, ref, atol=3e-2, rtol=3e-2), (
        "mismatch vs reference, max abs diff = "
        f"{float(jnp.max(jnp.abs(out - ref)))}")

    print("KERNEL_OK")
</pallas_src>

<mosaic_0001>
module attributes {stable_mosaic.version = 11 : i64} {
  func.func @_mlp_kernel(%arg0: i32, %arg1: memref<16x256xbf16, #tpu.memory_space<vmem>>, %arg2: memref<256x384xbf16, #tpu.memory_space<vmem>>, %arg3: memref<1x384xf32, #tpu.memory_space<vmem>>, %arg4: memref<384x256xbf16, #tpu.memory_space<vmem>>, %arg5: memref<1x256xf32, #tpu.memory_space<vmem>>, %arg6: memref<256x128xbf16, #tpu.memory_space<vmem>>, %arg7: memref<1x128xf32, #tpu.memory_space<vmem>>, %arg8: memref<128x128xbf16, #tpu.memory_space<vmem>>, %arg9: memref<1x128xf32, #tpu.memory_space<vmem>>, %arg10: memref<16x128xf32, #tpu.memory_space<vmem>>) attributes {dimension_semantics = [#tpu.dimension_semantics<parallel>], iteration_bounds = array<i64: 1>, scalar_prefetch = 0 : i64, scratch_operands = 0 : i64, tpu.core_type = #tpu.core_type<tc>, window_params = [{transform_indices = @transform_0, window_bounds = array<i64: 16, 256>}, {pipeline_mode = #tpu.pipeline_mode<synchronous>, transform_indices = @transform_1, window_bounds = array<i64: 256, 384>}, {pipeline_mode = #tpu.pipeline_mode<synchronous>, transform_indices = @transform_2, window_bounds = array<i64: 1, 384>}, {pipeline_mode = #tpu.pipeline_mode<synchronous>, transform_indices = @transform_3, window_bounds = array<i64: 384, 256>}, {pipeline_mode = #tpu.pipeline_mode<synchronous>, transform_indices = @transform_4, window_bounds = array<i64: 1, 256>}, {pipeline_mode = #tpu.pipeline_mode<synchronous>, transform_indices = @transform_5, window_bounds = array<i64: 256, 128>}, {pipeline_mode = #tpu.pipeline_mode<synchronous>, transform_indices = @transform_6, window_bounds = array<i64: 1, 128>}, {pipeline_mode = #tpu.pipeline_mode<synchronous>, transform_indices = @transform_7, window_bounds = array<i64: 128, 128>}, {pipeline_mode = #tpu.pipeline_mode<synchronous>, transform_indices = @transform_8, window_bounds = array<i64: 1, 128>}, {transform_indices = @transform_9, window_bounds = array<i64: 16, 128>}]} {
    %c0 = arith.constant 0 : index
    %c0_0 = arith.constant 0 : index
    %0 = vector.load %arg1[%c0, %c0_0] : memref<16x256xbf16, #tpu.memory_space<vmem>>, vector<16x256xbf16>
    %c0_1 = arith.constant 0 : index
    %c0_2 = arith.constant 0 : index
    %1 = vector.load %arg2[%c0_1, %c0_2] : memref<256x384xbf16, #tpu.memory_space<vmem>>, vector<256x384xbf16>
    %cst = arith.constant dense<0.000000e+00> : vector<16x384xf32>
    %2 = tpu.matmul %0, %1, %cst {dimension_numbers = #tpu.dot_dimension_numbers<[1], [0], [0], [1], [0, 0, 1, 1], [], []>} : vector<16x256xbf16>, vector<256x384xbf16>, vector<16x384xf32> -> vector<16x384xf32>
    %c0_3 = arith.constant 0 : index
    %c0_4 = arith.constant 0 : index
    %3 = vector.load %arg3[%c0_3, %c0_4] : memref<1x384xf32, #tpu.memory_space<vmem>>, vector<1x384xf32>
    %4 = vector.broadcast %3 : vector<1x384xf32> to vector<16x384xf32>
    %5 = arith.addf %2, %4 : vector<16x384xf32>
    %cst_5 = arith.constant 0.000000e+00 : f32
    %6 = vector.broadcast %cst_5 : f32 to vector<16x384xf32>
    %7 = arith.maximumf %5, %6 : vector<16x384xf32>
    %8 = arith.truncf %7 : vector<16x384xf32> to vector<16x384xbf16>
    %c0_6 = arith.constant 0 : index
    %c0_7 = arith.constant 0 : index
    %9 = vector.load %arg4[%c0_6, %c0_7] : memref<384x256xbf16, #tpu.memory_space<vmem>>, vector<384x256xbf16>
    %cst_8 = arith.constant dense<0.000000e+00> : vector<16x256xf32>
    %10 = tpu.matmul %8, %9, %cst_8 {dimension_numbers = #tpu.dot_dimension_numbers<[1], [0], [0], [1], [0, 0, 1, 1], [], []>} : vector<16x384xbf16>, vector<384x256xbf16>, vector<16x256xf32> -> vector<16x256xf32>
    %c0_9 = arith.constant 0 : index
    %c0_10 = arith.constant 0 : index
    %11 = vector.load %arg5[%c0_9, %c0_10] : memref<1x256xf32, #tpu.memory_space<vmem>>, vector<1x256xf32>
    %12 = vector.broadcast %11 : vector<1x256xf32> to vector<16x256xf32>
    %13 = arith.addf %10, %12 : vector<16x256xf32>
    %cst_11 = arith.constant 0.000000e+00 : f32
    %14 = vector.broadcast %cst_11 : f32 to vector<16x256xf32>
    %15 = arith.maximumf %13, %14 : vector<16x256xf32>
    %16 = arith.truncf %15 : vector<16x256xf32> to vector<16x256xbf16>
    %c0_12 = arith.constant 0 : index
    %c0_13 = arith.constant 0 : index
    %17 = vector.load %arg6[%c0_12, %c0_13] : memref<256x128xbf16, #tpu.memory_space<vmem>>, vector<256x128xbf16>
    %cst_14 = arith.constant dense<0.000000e+00> : vector<16x128xf32>
    %18 = tpu.matmul %16, %17, %cst_14 {dimension_numbers = #tpu.dot_dimension_numbers<[1], [0], [0], [1], [0, 0, 1, 1], [], []>} : vector<16x256xbf16>, vector<256x128xbf16>, vector<16x128xf32> -> vector<16x128xf32>
    %c0_15 = arith.constant 0 : index
    %c0_16 = arith.constant 0 : index
    %19 = vector.load %arg7[%c0_15, %c0_16] : memref<1x128xf32, #tpu.memory_space<vmem>>, vector<1x128xf32>
    %20 = vector.broadcast %19 : vector<1x128xf32> to vector<16x128xf32>
    %21 = arith.addf %18, %20 : vector<16x128xf32>
    %cst_17 = arith.constant 0.000000e+00 : f32
    %22 = vector.broadcast %cst_17 : f32 to vector<16x128xf32>
    %23 = arith.maximumf %21, %22 : vector<16x128xf32>
    %24 = arith.truncf %23 : vector<16x128xf32> to vector<16x128xbf16>
    %c0_18 = arith.constant 0 : index
    %c0_19 = arith.constant 0 : index
    %25 = vector.load %arg8[%c0_18, %c0_19] : memref<128x128xbf16, #tpu.memory_space<vmem>>, vector<128x128xbf16>
    %cst_20 = arith.constant dense<0.000000e+00> : vector<16x128xf32>
    %26 = tpu.matmul %24, %25, %cst_20 {dimension_numbers = #tpu.dot_dimension_numbers<[1], [0], [0], [1], [0, 0, 1, 1], [], []>} : vector<16x128xbf16>, vector<128x128xbf16>, vector<16x128xf32> -> vector<16x128xf32>
    %c0_21 = arith.constant 0 : index
    %c0_22 = arith.constant 0 : index
    %27 = vector.load %arg9[%c0_21, %c0_22] : memref<1x128xf32, #tpu.memory_space<vmem>>, vector<1x128xf32>
    %28 = vector.broadcast %27 : vector<1x128xf32> to vector<16x128xf32>
    %29 = arith.addf %26, %28 : vector<16x128xf32>
    %c0_23 = arith.constant 0 : index
    %c0_24 = arith.constant 0 : index
    %30 = vector.load %arg10[%c0_23, %c0_24] : memref<16x128xf32, #tpu.memory_space<vmem>>, vector<16x128xf32>
    tpu.vector_store %arg10[%c0_23, %c0_24], %29 {strides = array<i32>} : memref<16x128xf32, #tpu.memory_space<vmem>>, vector<16x128xf32>,
    return
  }
  func.func @transform_0(%arg0: i32) -> (i32, i32) {
    %c0_i32 = arith.constant 0 : i32
    %c0_i32_0 = arith.constant 0 : i32
    return %arg0, %c0_i32 : i32, i32
  }
  func.func @transform_1(%arg0: i32) -> (i32, i32) {
    %c0_i32 = arith.constant 0 : i32
    %c0_i32_0 = arith.constant 0 : i32
    %c0_i32_1 = arith.constant 0 : i32
    return %c0_i32, %c0_i32_0 : i32, i32
  }
  func.func @transform_2(%arg0: i32) -> (i32, i32) {
    %c0_i32 = arith.constant 0 : i32
    %c0_i32_0 = arith.constant 0 : i32
    %c0_i32_1 = arith.constant 0 : i32
    return %c0_i32, %c0_i32_0 : i32, i32
  }
  func.func @transform_3(%arg0: i32) -> (i32, i32) {
    %c0_i32 = arith.constant 0 : i32
    %c0_i32_0 = arith.constant 0 : i32
    %c0_i32_1 = arith.constant 0 : i32
    return %c0_i32, %c0_i32_0 : i32, i32
  }
  func.func @transform_4(%arg0: i32) -> (i32, i32) {
    %c0_i32 = arith.constant 0 : i32
    %c0_i32_0 = arith.constant 0 : i32
    %c0_i32_1 = arith.constant 0 : i32
    return %c0_i32, %c0_i32_0 : i32, i32
  }
  func.func @transform_5(%arg0: i32) -> (i32, i32) {
    %c0_i32 = arith.constant 0 : i32
    %c0_i32_0 = arith.constant 0 : i32
    %c0_i32_1 = arith.constant 0 : i32
    return %c0_i32, %c0_i32_0 : i32, i32
  }
  func.func @transform_6(%arg0: i32) -> (i32, i32) {
    %c0_i32 = arith.constant 0 : i32
    %c0_i32_0 = arith.constant 0 : i32
    %c0_i32_1 = arith.constant 0 : i32
    return %c0_i32, %c0_i32_0 : i32, i32
  }
  func.func @transform_7(%arg0: i32) -> (i32, i32) {
    %c0_i32 = arith.constant 0 : i32
    %c0_i32_0 = arith.constant 0 : i32
    %c0_i32_1 = arith.constant 0 : i32
    return %c0_i32, %c0_i32_0 : i32, i32
  }
  func.func @transform_8(%arg0: i32) -> (i32, i32) {
    %c0_i32 = arith.constant 0 : i32
    %c0_i32_0 = arith.constant 0 : i32
    %c0_i32_1 = arith.constant 0 : i32
    return %c0_i32, %c0_i32_0 : i32, i32
  }
  func.func @transform_9(%arg0: i32) -> (i32, i32) {
    %c0_i32 = arith.constant 0 : i32
    %c0_i32_0 = arith.constant 0 : i32
    return %arg0, %c0_i32 : i32, i32
  }
}

</mosaic_0001>

<bundles_post_ra>
// kernel: _forward_impl.1
= control target key start
LH: loop header
LB: loop body
LE: loop exit
PB: predicated region body
PF: predicated region fallthrough
CT: control target
= control target key end

     0   :  { %s2499_s0 = inlined_call_operand.vmem [shape: bf16[16,256], index: 0, kind: input, shape index: {}]   ;;  %s2500_s1 = inlined_call_operand.vmem [shape: bf16[256,384], index: 1, kind: input, shape index: {}]   ;;  %s2501_s2 = inlined_call_operand.vmem [shape: f32[1,384], index: 2, kind: input, shape index: {}]   ;;  %s2502_s3 = inlined_call_operand.vmem [shape: bf16[384,256], index: 3, kind: input, shape index: {}]   ;;  %s2503_s4 = inlined_call_operand.vmem [shape: f32[1,256], index: 4, kind: input, shape index: {}]   ;;  %s2504_s5 = inlined_call_operand.vmem [shape: bf16[256,128], index: 5, kind: input, shape index: {}]   ;;  %s2505_s6 = inlined_call_operand.vmem [shape: f32[1,128], index: 6, kind: input, shape index: {}]   ;;  %s2506_s7 = inlined_call_operand.vmem [shape: bf16[128,128], index: 7, kind: input, shape index: {}]   ;;  %s2507_s8 = inlined_call_operand.vmem [shape: f32[1,128], index: 8, kind: input, shape index: {}]   ;;  %s2508_s9 = inlined_call_operand.hbm [shape: f32[16,128], index: 9, kind: output, shape index: {}]  }
   0x1   :  { %v1209_v0 = vld [vmem:[%s2500_s1 + $0xa8] sm:$0xf]  ;;  %v1627_v1 = vld [vmem:[%s2500_s1 + $0xb0] sm:$0xf0]  ;;  %v1626_v5 = vld [vmem:[%s2500_s1 + $0xac] sm:$0xf] }
   0x2   :  { %v1305_v2 = vld [vmem:[%s2500_s1 + $0x168] sm:$0xf]  ;;  %v1210_v3 = vor.u32 %v1627_v1, %v1209_v0  ;;  %v1651_v4 = vld [vmem:[%s2500_s1 + $0x170] sm:$0xf0]  ;;  %v1211_v6 = vld [vmem:[%s2500_s1 + $0xb4] sm:$0xf0] }
   0x3   :  { %v1306_v7 = vor.u32 %v1651_v4, %v1305_v2  ;;  %v1214_v8 = vor.u32 %v1626_v5, %v1211_v6  ;;  %v1650_v9 = vld [vmem:[%s2500_s1 + $0x16c] sm:$0xf]  ;;  %v1307_v10 = vld [vmem:[%s2500_s1 + $0x174] sm:$0xf0]  ;;  %v1197_v11 = vld [vmem:[%s2500_s1 + $0x90] sm:$0xf] }
   0x4   :  { %373 = vmatpush.bf16.msra.mxu0 %v1210_v3  ;;  %v1310_v12 = vor.u32 %v1650_v9, %v1307_v10  ;;  %v1624_v13 = vld [vmem:[%s2500_s1 + $0x98] sm:$0xf0]  ;;  %v1293_v14 = vld [vmem:[%s2500_s1 + $0x150] sm:$0xf]  ;;  %v1623_v18 = vld [vmem:[%s2500_s1 + $0x94] sm:$0xf] }
   0x5   :  { %v1648_v15 = vld [vmem:[%s2500_s1 + $0x158] sm:$0xf0]  ;;  %387 = vmatpush.bf16.msra.mxu1 %v1306_v7  ;;  %401 = vmatpush.bf16.msra.mxu2 %v1214_v8  ;;  %v1198_v16 = vor.u32 %v1624_v13, %v1197_v11  ;;  %v1199_v19 = vld [vmem:[%s2500_s1 + $0x9c] sm:$0xf0]  ;;  %v1647_v20 = vld [vmem:[%s2500_s1 + $0x154] sm:$0xf] }
   0x6   :  { %v1294_v17 = vor.u32 %v1648_v15, %v1293_v14  ;;  %415 = vmatpush.bf16.msra.mxu3 %v1310_v12  ;;  %v1202_v21 = vor.u32 %v1623_v18, %v1199_v19  ;;  %v1295_v22 = vld [vmem:[%s2500_s1 + $0x15c] sm:$0xf0]  ;;  %v1185_v23 = vld [vmem:[%s2500_s1 + $0x78] sm:$0xf]  ;;  %v1621_v24 = vld [vmem:[%s2500_s1 + $0x80] sm:$0xf0] }
   0x7   :  { %v1298_v25 = vor.u32 %v1647_v20, %v1295_v22  ;;  %v1281_v26 = vld [vmem:[%s2500_s1 + $0x138] sm:$0xf]  ;;  %v1645_v27 = vld [vmem:[%s2500_s1 + $0x140] sm:$0xf0]  ;;  %v1620_v28 = vld [vmem:[%s2500_s1 + $0x7c] sm:$0xf]  ;;  %v1186_v29 = vor.u32 %v1621_v24, %v1185_v23 }
   0x8   :  { %374 = vmatpush.bf16.msra.mxu0 %v1198_v16  ;;  %v1187_v30 = vld [vmem:[%s2500_s1 + $0x84] sm:$0xf0]  ;;  %v1644_v31 = vld [vmem:[%s2500_s1 + $0x13c] sm:$0xf]  ;;  %v1282_v33 = vor.u32 %v1645_v27, %v1281_v26  ;;  %v1173_v35 = vld [vmem:[%s2500_s1 + $0x60] sm:$0xf] }
   0x9   :  { %v1283_v32 = vld [vmem:[%s2500_s1 + $0x144] sm:$0xf0]  ;;  %388 = vmatpush.bf16.msra.mxu1 %v1294_v17  ;;  %402 = vmatpush.bf16.msra.mxu2 %v1202_v21  ;;  %v1190_v34 = vor.u32 %v1620_v28, %v1187_v30  ;;  %v1618_v36 = vld [vmem:[%s2500_s1 + $0x68] sm:$0xf0]  ;;  %v1269_v37 = vld [vmem:[%s2500_s1 + $0x120] sm:$0xf] }
   0xa   :  { %416 = vmatpush.bf16.msra.mxu3 %v1298_v25  ;;  %v1286_v38 = vor.u32 %v1644_v31, %v1283_v32  ;;  %v1642_v39 = vld [vmem:[%s2500_s1 + $0x128] sm:$0xf0]  ;;  %v1617_v40 = vld [vmem:[%s2500_s1 + $0x64] sm:$0xf]  ;;  %v1175_v41 = vld [vmem:[%s2500_s1 + $0x6c] sm:$0xf0]  ;;  %v1174_v44 = vor.u32 %v1618_v36, %v1173_v35 }
   0xb   :  { %v1641_v42 = vld [vmem:[%s2500_s1 + $0x124] sm:$0xf]  ;;  %v1271_v43 = vld [vmem:[%s2500_s1 + $0x12c] sm:$0xf0]  ;;  %v1270_v45 = vor.u32 %v1642_v39, %v1269_v37  ;;  %v1178_v46 = vor.u32 %v1617_v40, %v1175_v41  ;;  %v1161_v47 = vld [vmem:[%s2500_s1 + $0x48] sm:$0xf] }
   0xc   :  { %375 = vmatpush.bf16.msra.mxu0 %v1186_v29  ;;  %v1615_v48 = vld [vmem:[%s2500_s1 + $0x50] sm:$0xf0]  ;;  %v1257_v49 = vld [vmem:[%s2500_s1 + $0x108] sm:$0xf]  ;;  %v1274_v50 = vor.u32 %v1641_v42, %v1271_v43  ;;  %v1614_v52 = vld [vmem:[%s2500_s1 + $0x4c] sm:$0xf] }
   0xd   :  { %389 = vmatpush.bf16.msra.mxu1 %v1282_v33  ;;  %403 = vmatpush.bf16.msra.mxu2 %v1190_v34  ;;  %v1639_v51 = vld [vmem:[%s2500_s1 + $0x110] sm:$0xf0]  ;;  %v1163_v53 = vld [vmem:[%s2500_s1 + $0x54] sm:$0xf0]  ;;  %v1638_v54 = vld [vmem:[%s2500_s1 + $0x10c] sm:$0xf]  ;;  %v1162_v56 = vor.u32 %v1615_v48, %v1161_v47 }
   0xe   :  { %417 = vmatpush.bf16.msra.mxu3 %v1286_v38  ;;  %v1259_v55 = vld [vmem:[%s2500_s1 + $0x114] sm:$0xf0]  ;;  %v1258_v57 = vor.u32 %v1639_v51, %v1257_v49  ;;  %v1166_v58 = vor.u32 %v1614_v52, %v1163_v53  ;;  %v1149_v59 = vld [vmem:[%s2500_s1 + $0x30] sm:$0xf]  ;;  %v1612_v60 = vld [vmem:[%s2500_s1 + $0x38] sm:$0xf0] }
   0xf   :  { %v1245_v61 = vld [vmem:[%s2500_s1 + $0xf0] sm:$0xf]  ;;  %v1262_v62 = vor.u32 %v1638_v54, %v1259_v55  ;;  %v1636_v63 = vld [vmem:[%s2500_s1 + $0xf8] sm:$0xf0]  ;;  %v1611_v0 = vld [vmem:[%s2500_s1 + $0x34] sm:$0xf]  ;;  %v1150_v4 = vor.u32 %v1612_v60, %v1149_v59 }
  0x10   :  { %376 = vmatpush.bf16.msra.mxu0 %v1174_v44  ;;  %v1151_v1 = vld [vmem:[%s2500_s1 + $0x3c] sm:$0xf0]  ;;  %v1635_v2 = vld [vmem:[%s2500_s1 + $0xf4] sm:$0xf]  ;;  %v1246_v5 = vor.u32 %v1636_v63, %v1245_v61  ;;  %v1137_v7 = vld [vmem:[%s2500_s1 + $0x18] sm:$0xf] }
  0x11   :  { %390 = vmatpush.bf16.msra.mxu1 %v1270_v45  ;;  %404 = vmatpush.bf16.msra.mxu2 %v1178_v46  ;;  %v1247_v3 = vld [vmem:[%s2500_s1 + $0xfc] sm:$0xf0]  ;;  %v1154_v6 = vor.u32 %v1611_v0, %v1151_v1  ;;  %v1609_v8 = vld [vmem:[%s2500_s1 + $0x20] sm:$0xf0]  ;;  %v1233_v9 = vld [vmem:[%s2500_s1 + $0xd8] sm:$0xf] }
  0x12   :  { %418 = vmatpush.bf16.msra.mxu3 %v1274_v50  ;;  %v1250_v10 = vor.u32 %v1635_v2, %v1247_v3  ;;  %v1633_v11 = vld [vmem:[%s2500_s1 + $0xe0] sm:$0xf0]  ;;  %v1608_v12 = vld [vmem:[%s2500_s1 + $0x1c] sm:$0xf]  ;;  %v1139_v13 = vld [vmem:[%s2500_s1 + $0x24] sm:$0xf0]  ;;  %v1138_v16 = vor.u32 %v1609_v8, %v1137_v7 }
  0x13   :  { %v1632_v14 = vld [vmem:[%s2500_s1 + $0xdc] sm:$0xf]  ;;  %v1235_v15 = vld [vmem:[%s2500_s1 + $0xe4] sm:$0xf0]  ;;  %v1125_v17 = vld [vmem:[%s2500_s1] sm:$0xf]  ;;  %v1234_v19 = vor.u32 %v1633_v11, %v1233_v9  ;;  %v1142_v20 = vor.u32 %v1608_v12, %v1139_v13 }
  0x14   :  { %377 = vmatpush.bf16.msra.mxu0 %v1162_v56  ;;  %v1606_v18 = vld [vmem:[%s2500_s1 + $0x8] sm:$0xf0]  ;;  %v1221_v21 = vld [vmem:[%s2500_s1 + $0xc0] sm:$0xf]  ;;  %v1605_v23 = vld [vmem:[%s2500_s1 + $0x4] sm:$0xf]  ;;  %v1238_v24 = vor.u32 %v1632_v14, %v1235_v15 }
  0x15   :  { %391 = vmatpush.bf16.msra.mxu1 %v1258_v57  ;;  %405 = vmatpush.bf16.msra.mxu2 %v1166_v58  ;;  %v1630_v22 = vld [vmem:[%s2500_s1 + $0xc8] sm:$0xf0]  ;;  %v1127_v25 = vld [vmem:[%s2500_s1 + $0xc] sm:$0xf0]  ;;  %v1629_v26 = vld [vmem:[%s2500_s1 + $0xc4] sm:$0xf]  ;;  %v1126_v31 = vor.u32 %v1606_v18, %v1125_v17 }
  0x16   :  { %419 = vmatpush.bf16.msra.mxu3 %v1262_v62  ;;  %v1223_v27 = vld [vmem:[%s2500_s1 + $0xcc] sm:$0xf0]  ;;  %v1628_v29 = vld [vmem:[%s2500_s1 + $0xb8] sm:$0xf0]  ;;  %v1117_v33 = vld [vmem:[%s2499_s0] sm:$0xf]  ;;  %v1222_v35 = vor.u32 %v1630_v22, %v1221_v21  ;;  %v1130_v36 = vor.u32 %v1605_v23, %v1127_v25 }
  0x17   :  { %v1217_v28 = vld [vmem:[%s2500_s1 + $0xb0] sm:$0xf]  ;;  %v1652_v32 = vld [vmem:[%s2500_s1 + $0x178] sm:$0xf0]  ;;  %v1604_v34 = vld [vmem:[%s2499_s0 + $0x4] sm:$0xf0]  ;;  %v1226_v39 = vor.u32 %v1629_v26, %v1223_v27 }
  0x18   :  { %378 = vmatpush.bf16.msra.mxu0 %v1150_v4  ;;  %v1313_v30 = vld [vmem:[%s2500_s1 + $0x170] sm:$0xf]  ;;  %v1603_v37 = vld [vmem:[%s2499_s0 + $0x4] sm:$0xf]  ;;  %v1119_v38 = vld [vmem:[%s2499_s0 + $0x8] sm:$0xf0]  ;;  %v1218_v40 = vor.u32 %v1628_v29, %v1217_v28  ;;  %v2025_v42 = vor.u32 %v1604_v34, %v1117_v33 }
  0x19   :  { %392 = vmatpush.bf16.msra.mxu1 %v1246_v5  ;;  %406 = vmatpush.bf16.msra.mxu2 %v1154_v6  ;;  %v1314_v41 = vor.u32 %v1652_v32, %v1313_v30  ;;  %v1205_v43 = vld [vmem:[%s2500_s1 + $0x98] sm:$0xf]  ;;  %v1625_v44 = vld [vmem:[%s2500_s1 + $0xa0] sm:$0xf0]  ;;  %v2033_v45 = vor.u32 %v1603_v37, %v1119_v38  ;;  %v1193_v49 = vld [vmem:[%s2500_s1 + $0x80] sm:$0xf] }
  0x1a   :  { %420 = vmatpush.bf16.msra.mxu3 %v1250_v10  ;;  %v1301_v46 = vld [vmem:[%s2500_s1 + $0x158] sm:$0xf]  ;;  %v1649_v47 = vld [vmem:[%s2500_s1 + $0x160] sm:$0xf0]  ;;  %v1206_v48 = vor.u32 %v1625_v44, %v1205_v43  ;;  %v1373_v50 = vld [vmem:[%s2502_s3 + $0x70] sm:$0xf] }
  0x1b   :  { %v1668_v51 = vld [vmem:[%s2502_s3 + $0x74] sm:$0xf0]  ;;  %v1302_v52 = vor.u32 %v1649_v47, %v1301_v46  ;;  %v1622_v53 = vld [vmem:[%s2500_s1 + $0x88] sm:$0xf0]  ;;  %v1365_v55 = vld [vmem:[%s2502_s3 + $0x60] sm:$0xf] }
  0x1c   :  { %379 = vmatpush.bf16.msra.mxu0 %v1138_v16  ;;  %v1374_v54 = vor.u32 %v1668_v51, %v1373_v50  ;;  %v1666_v56 = vld [vmem:[%s2502_s3 + $0x64] sm:$0xf0]  ;;  %v1289_v57 = vld [vmem:[%s2500_s1 + $0x140] sm:$0xf]  ;;  %v1646_v58 = vld [vmem:[%s2500_s1 + $0x148] sm:$0xf0]  ;;  %v1194_v62 = vor.u32 %v1622_v53, %v1193_v49 }
  0x1d   :  { %393 = vmatpush.bf16.msra.mxu1 %v1234_v19  ;;  %407 = vmatpush.bf16.msra.mxu2 %v1142_v20  ;;  %v1366_v59 = vor.u32 %v1666_v56, %v1365_v55  ;;  %v1437_v60 = vld [vmem:[%s2502_s3 + $0xf0] sm:$0xf]  ;;  %v1684_v61 = vld [vmem:[%s2502_s3 + $0xf4] sm:$0xf0]  ;;  %v1181_v63 = vld [vmem:[%s2500_s1 + $0x68] sm:$0xf]  ;;  %v1290_v3 = vor.u32 %v1646_v58, %v1289_v57 }
  0x1e   :  { %421 = vmatpush.bf16.msra.mxu3 %v1238_v24  ;;  %v1357_v0 = vld [vmem:[%s2502_s3 + $0x50] sm:$0xf]  ;;  %v1664_v1 = vld [vmem:[%s2502_s3 + $0x54] sm:$0xf0]  ;;  %v1438_v2 = vor.u32 %v1684_v61, %v1437_v60  ;;  %v1619_v4 = vld [vmem:[%s2500_s1 + $0x70] sm:$0xf0] }
  0x1f   :  { %v1429_v5 = vld [vmem:[%s2502_s3 + $0xe0] sm:$0xf]  ;;  %v1682_v6 = vld [vmem:[%s2502_s3 + $0xe4] sm:$0xf0]  ;;  %v1643_v8 = vld [vmem:[%s2500_s1 + $0x130] sm:$0xf0]  ;;  %v1358_v10 = vor.u32 %v1664_v1, %v1357_v0  ;;  %v1182_v13 = vor.u32 %v1619_v4, %v1181_v63 }
  0x20   :  { %380 = vmatpush.bf16.msra.mxu0 %v1126_v31  ;;  %v1277_v7 = vld [vmem:[%s2500_s1 + $0x128] sm:$0xf]  ;;  %v1430_v9 = vor.u32 %v1682_v6, %v1429_v5  ;;  %v1421_v11 = vld [vmem:[%s2502_s3 + $0xd0] sm:$0xf]  ;;  %v1680_v12 = vld [vmem:[%s2502_s3 + $0xd4] sm:$0xf0] }
  0x21   :  { %394 = vmatpush.bf16.msra.mxu1 %v1222_v35  ;;  %408 = vmatpush.bf16.msra.mxu2 %v1130_v36  ;;  %v1349_v14 = vld [vmem:[%s2502_s3 + $0x40] sm:$0xf]  ;;  %v1662_v15 = vld [vmem:[%s2502_s3 + $0x44] sm:$0xf0]  ;;  %v1278_v16 = vor.u32 %v1643_v8, %v1277_v7  ;;  %v1169_v17 = vld [vmem:[%s2500_s1 + $0x50] sm:$0xf]  ;;  %v1422_v21 = vor.u32 %v1680_v12, %v1421_v11 }
  0x22   :  { %422 = vmatpush.bf16.msra.mxu3 %v1226_v39  ;;  %v1616_v18 = vld [vmem:[%s2500_s1 + $0x58] sm:$0xf0]  ;;  %v1265_v19 = vld [vmem:[%s2500_s1 + $0x110] sm:$0xf]  ;;  %v1413_v22 = vld [vmem:[%s2502_s3 + $0xc0] sm:$0xf]  ;;  %v1350_v23 = vor.u32 %v1662_v15, %v1349_v14 }
  0x23   :  { %381 = vmatmul.bf16.vlgmr.msra.gmra.mxu0 %v2025_v42  ;;  %v1640_v20 = vld [vmem:[%s2500_s1 + $0x118] sm:$0xf0]  ;;  %v1678_v24 = vld [vmem:[%s2502_s3 + $0xc4] sm:$0xf0] }
  0x24   :  { %429 = vmatpush.bf16.msrb.mxu0 %v1218_v40  ;;  %409 = vmatmul.bf16.vlgmr.msra.gmra.mxu2 %v2025_v42 }
  0x25   :  { %443 = vmatpush.bf16.msrb.mxu1 %v1314_v41  ;;  %423 = vmatmul.bf16.vlgmr.msra.gmra.mxu3 %v2033_v45 }
  0x26   :  { %395 = vmatmul.bf16.vlgmr.msra.gmra.mxu1 %v2033_v45  ;;  %760 = vmatpush.bf16.msrb.mxu2 %v1374_v54 }
  0x27   :  { %774 = vmatpush.bf16.msrb.mxu3 %v1438_v2 }
  0x28   :  { %430 = vmatpush.bf16.msrb.mxu0 %v1206_v48 }
  0x29   :  { %444 = vmatpush.bf16.msrb.mxu1 %v1302_v52 }
  0x2a   :  { %761 = vmatpush.bf16.msrb.mxu2 %v1366_v59 }
  0x2b   :  { %775 = vmatpush.bf16.msrb.mxu3 %v1430_v9 }
  0x2c   :  { %431 = vmatpush.bf16.msrb.mxu0 %v1194_v62 }
  0x2d   :  { %445 = vmatpush.bf16.msrb.mxu1 %v1290_v3 }
  0x2e   :  { %762 = vmatpush.bf16.msrb.mxu2 %v1358_v10 }
  0x2f   :  { %14 = vsyncpa [#allocation3], 0  ;;  %v1170_v25 = vor.u32 %v1616_v18, %v1169_v17  ;;  %v1341_v26 = vld [vmem:[%s2502_s3 + $0x30] sm:$0xf]  ;;  %v1660_v27 = vld [vmem:[%s2502_s3 + $0x34] sm:$0xf0]  ;;  %v1266_v28 = vor.u32 %v1640_v20, %v1265_v19  ;;  %776 = vmatpush.bf16.msrb.mxu3 %v1422_v21  ;;  %v1414_v33 = vor.u32 %v1678_v24, %v1413_v22 }
  0x30   :  { %432 = vmatpush.bf16.msrb.mxu0 %v1182_v13  ;;  %v1157_v29 = vld [vmem:[%s2500_s1 + $0x38] sm:$0xf]  ;;  %v1613_v30 = vld [vmem:[%s2500_s1 + $0x40] sm:$0xf0]  ;;  %v1342_v34 = vor.u32 %v1660_v27, %v1341_v26  ;;  %v1333_v36 = vld [vmem:[%s2502_s3 + $0x20] sm:$0xf] }
  0x31   :  { %446 = vmatpush.bf16.msrb.mxu1 %v1278_v16  ;;  %v1253_v31 = vld [vmem:[%s2500_s1 + $0xf8] sm:$0xf]  ;;  %v1637_v32 = vld [vmem:[%s2500_s1 + $0x100] sm:$0xf0]  ;;  %v1158_v35 = vor.u32 %v1613_v30, %v1157_v29  ;;  %v1658_v37 = vld [vmem:[%s2502_s3 + $0x24] sm:$0xf0] }
  0x32   :  { %763 = vmatpush.bf16.msrb.mxu2 %v1350_v23  ;;  %v1254_v38 = vor.u32 %v1637_v32, %v1253_v31  ;;  %v1145_v39 = vld [vmem:[%s2500_s1 + $0x20] sm:$0xf]  ;;  %v1610_v40 = vld [vmem:[%s2500_s1 + $0x28] sm:$0xf0]  ;;  %v1334_v44 = vor.u32 %v1658_v37, %v1333_v36  ;;  %v1325_v47 = vld [vmem:[%s2502_s3 + $0x10] sm:$0xf] }
  0x33   :  { %v1241_v41 = vld [vmem:[%s2500_s1 + $0xe0] sm:$0xf]  ;;  %v1634_v43 = vld [vmem:[%s2500_s1 + $0xe8] sm:$0xf0]  ;;  %777 = vmatpush.bf16.msrb.mxu3 %v1414_v33  ;;  %v1146_v46 = vor.u32 %v1610_v40, %v1145_v39  ;;  %v1656_v48 = vld [vmem:[%s2502_s3 + $0x14] sm:$0xf0] }
  0x34   :  { %433 = vmatpush.bf16.msrb.mxu0 %v1170_v25  ;;  %v1242_v49 = vor.u32 %v1634_v43, %v1241_v41  ;;  %v1133_v50 = vld [vmem:[%s2500_s1 + $0x8] sm:$0xf]  ;;  %v1607_v51 = vld [vmem:[%s2500_s1 + $0x10] sm:$0xf0]  ;;  %v1375_v55 = vld [vmem:[%s2502_s3 + $0x78] sm:$0xf0]  ;;  %v1326_v56 = vor.u32 %v1656_v48, %v1325_v47 }
  0x35   :  { %447 = vmatpush.bf16.msrb.mxu1 %v1266_v28  ;;  %v1229_v52 = vld [vmem:[%s2500_s1 + $0xc8] sm:$0xf]  ;;  %v1631_v53 = vld [vmem:[%s2500_s1 + $0xd0] sm:$0xf0]  ;;  %v1134_v57 = vor.u32 %v1607_v51, %v1133_v50  ;;  %v1665_v60 = vld [vmem:[%s2502_s3 + $0x64] sm:$0xf] }
  0x36   :  { %764 = vmatpush.bf16.msrb.mxu2 %v1342_v34  ;;  %v1667_v54 = vld [vmem:[%s2502_s3 + $0x74] sm:$0xf]  ;;  %v1230_v58 = vor.u32 %v1631_v53, %v1229_v52  ;;  %v1367_v61 = vld [vmem:[%s2502_s3 + $0x68] sm:$0xf0]  ;;  %v1359_v0 = vld [vmem:[%s2502_s3 + $0x58] sm:$0xf0] }
  0x37   :  { %v1378_v59 = vor.u32 %v1667_v54, %v1375_v55  ;;  %v1370_v62 = vor.u32 %v1665_v60, %v1367_v61  ;;  %v1663_v63 = vld [vmem:[%s2502_s3 + $0x54] sm:$0xf]  ;;  %v1661_v2 = vld [vmem:[%s2502_s3 + $0x44] sm:$0xf]  ;;  %v1317_v4 = vld [vmem:[%s2502_s3] sm:$0xf] }
  0x38   :  { %434 = vmatpush.bf16.msrb.mxu0 %v1158_v35  ;;  %v1362_v1 = vor.u32 %v1663_v63, %v1359_v0  ;;  %v1405_v6 = vld [vmem:[%s2502_s3 + $0xb0] sm:$0xf]  ;;  %v1676_v7 = vld [vmem:[%s2502_s3 + $0xb4] sm:$0xf0]  ;;  %v1659_v8 = vld [vmem:[%s2502_s3 + $0x34] sm:$0xf] }
  0x39   :  { %448 = vmatpush.bf16.msrb.mxu1 %v1254_v38  ;;  %v1406_v9 = vor.u32 %v1676_v7, %v1405_v6  ;;  %v1343_v10 = vld [vmem:[%s2502_s3 + $0x38] sm:$0xf0]  ;;  %v1683_v11 = vld [vmem:[%s2502_s3 + $0xf4] sm:$0xf]  ;;  %v1397_v15 = vld [vmem:[%s2502_s3 + $0xa0] sm:$0xf] }
  0x3a   :  { %765 = vmatpush.bf16.msrb.mxu2 %v1334_v44  ;;  %v1439_v12 = vld [vmem:[%s2502_s3 + $0xf8] sm:$0xf0]  ;;  %v1346_v13 = vor.u32 %v1659_v8, %v1343_v10  ;;  %v1674_v16 = vld [vmem:[%s2502_s3 + $0xa4] sm:$0xf0]  ;;  %v1657_v18 = vld [vmem:[%s2502_s3 + $0x24] sm:$0xf] }
  0x3b   :  { %v1442_v14 = vor.u32 %v1683_v11, %v1439_v12  ;;  %778 = vmatpush.bf16.msrb.mxu3 %v1406_v9  ;;  %v1398_v17 = vor.u32 %v1674_v16, %v1397_v15  ;;  %v1335_v19 = vld [vmem:[%s2502_s3 + $0x28] sm:$0xf0]  ;;  %v1681_v20 = vld [vmem:[%s2502_s3 + $0xe4] sm:$0xf]  ;;  %v1389_v24 = vld [vmem:[%s2502_s3 + $0x90] sm:$0xf] }
  0x3c   :  { %435 = vmatpush.bf16.msrb.mxu0 %v1146_v46  ;;  %v1338_v21 = vor.u32 %v1657_v18, %v1335_v19  ;;  %v1431_v22 = vld [vmem:[%s2502_s3 + $0xe8] sm:$0xf0]  ;;  %v1672_v25 = vld [vmem:[%s2502_s3 + $0x94] sm:$0xf0]  ;;  %v1655_v26 = vld [vmem:[%s2502_s3 + $0x14] sm:$0xf] }
  0x3d   :  { %449 = vmatpush.bf16.msrb.mxu1 %v1242_v49  ;;  %v1434_v23 = vor.u32 %v1681_v20, %v1431_v22  ;;  %v1390_v27 = vor.u32 %v1672_v25, %v1389_v24  ;;  %v1327_v28 = vld [vmem:[%s2502_s3 + $0x18] sm:$0xf0]  ;;  %v1679_v29 = vld [vmem:[%s2502_s3 + $0xd4] sm:$0xf]  ;;  %v1381_v33 = vld [vmem:[%s2502_s3 + $0x80] sm:$0xf] }
  0x3e   :  { %766 = vmatpush.bf16.msrb.mxu2 %v1326_v56  ;;  %v1423_v30 = vld [vmem:[%s2502_s3 + $0xd8] sm:$0xf0]  ;;  %v1330_v31 = vor.u32 %v1655_v26, %v1327_v28  ;;  %v1670_v34 = vld [vmem:[%s2502_s3 + $0x84] sm:$0xf0]  ;;  %v1653_v35 = vld [vmem:[%s2502_s3 + $0x4] sm:$0xf] }
  0x3f   :  { %779 = vmatpush.bf16.msrb.mxu3 %v1398_v17  ;;  %v1426_v32 = vor.u32 %v1679_v29, %v1423_v30  ;;  %v1382_v36 = vor.u32 %v1670_v34, %v1381_v33  ;;  %v1319_v37 = vld [vmem:[%s2502_s3 + $0x8] sm:$0xf0]  ;;  %v1677_v38 = vld [vmem:[%s2502_s3 + $0xc4] sm:$0xf]  ;;  %v1501_v43 = vld [vmem:[%s2502_s3 + $0x170] sm:$0xf] }
  0x40   :  { %436 = vmatpush.bf16.msrb.mxu0 %v1134_v57  ;;  %v1415_v39 = vld [vmem:[%s2502_s3 + $0xc8] sm:$0xf0]  ;;  %v1322_v40 = vor.u32 %v1653_v35, %v1319_v37  ;;  %v1700_v44 = vld [vmem:[%s2502_s3 + $0x174] sm:$0xf0]  ;;  %v1699_v46 = vld [vmem:[%s2502_s3 + $0x174] sm:$0xf] }
  0x41   :  { %450 = vmatpush.bf16.msrb.mxu1 %v1230_v58  ;;  %v1418_v41 = vor.u32 %v1677_v38, %v1415_v39  ;;  %v1502_v47 = vor.u32 %v1700_v44, %v1501_v43  ;;  %v1503_v48 = vld [vmem:[%s2502_s3 + $0x178] sm:$0xf0]  ;;  %v1675_v50 = vld [vmem:[%s2502_s3 + $0xb4] sm:$0xf]  ;;  %v1493_v53 = vld [vmem:[%s2502_s3 + $0x160] sm:$0xf] }
  0x42   :  { %v1506_v49 = vor.u32 %v1699_v46, %v1503_v48  ;;  %v1407_v51 = vld [vmem:[%s2502_s3 + $0xb8] sm:$0xf0]  ;;  %v1698_v54 = vld [vmem:[%s2502_s3 + $0x164] sm:$0xf0]  ;;  %v1697_v55 = vld [vmem:[%s2502_s3 + $0x164] sm:$0xf] }
  0x43   :  { %437 = vmatmul.bf16.vlgmr.msrb.gmra.mxu0 %v2025_v42  ;;  %v1351_v42 = vld [vmem:[%s2502_s3 + $0x48] sm:$0xf0]  ;;  %780 = vmatpush.bf16.msrb.mxu3 %v1390_v27  ;;  %v1410_v52 = vor.u32 %v1675_v50, %v1407_v51  ;;  %v1494_v56 = vor.u32 %v1698_v54, %v1493_v53  ;;  %v1696_v63 = vld [vmem:[%s2502_s3 + $0x154] sm:$0xf0]  ;;  %v1695_v0 = vld [vmem:[%s2502_s3 + $0x154] sm:$0xf] }
  0x44   :  { %451 = vmatmul.bf16.vlgmr.msrb.gmra.mxu1 %v2033_v45  ;;  %v1354_v3 = vor.u32 %v1661_v2, %v1351_v42  ;;  %v1654_v45 = vld [vmem:[%s2502_s3 + $0x4] sm:$0xf0]  ;;  %788 = vmatpush.bf16.msra.mxu0 %v1502_v47  ;;  %v1495_v57 = vld [vmem:[%s2502_s3 + $0x168] sm:$0xf0]  ;;  %v1487_v2 = vld [vmem:[%s2502_s3 + $0x158] sm:$0xf0] }
  0x45   :  { %802 = vmatpush.bf16.msra.mxu1 %v1378_v59  ;;  %v1318_v5 = vor.u32 %v1654_v45, %v1317_v4  ;;  %v1498_v58 = vor.u32 %v1697_v55, %v1495_v57  ;;  %v1673_v59 = vld [vmem:[%s2502_s3 + $0xa4] sm:$0xf]  ;;  %v1399_v60 = vld [vmem:[%s2502_s3 + $0xa8] sm:$0xf0]  ;;  %v1490_v42 = vor.u32 %v1695_v0, %v1487_v2  ;;  %v1391_v4 = vld [vmem:[%s2502_s3 + $0x98] sm:$0xf0] }
  0x46   :  { %v1402_v61 = vor.u32 %v1673_v59, %v1399_v60  ;;  %v1477_v45 = vld [vmem:[%s2502_s3 + $0x140] sm:$0xf]  ;;  %v1693_v6 = vld [vmem:[%s2502_s3 + $0x144] sm:$0xf]  ;;  %v1479_v7 = vld [vmem:[%s2502_s3 + $0x148] sm:$0xf0] }
  0x47   :  { %767 = vmatpush.bf16.msrb.mxu2 %v1318_v5  ;;  %781 = vmatpush.bf16.msrb.mxu3 %v1382_v36  ;;  %v1694_v5 = vld [vmem:[%s2502_s3 + $0x144] sm:$0xf0]  ;;  %v1482_v10 = vor.u32 %v1693_v6, %v1479_v7  ;;  %v2356_v11 = vld [vmem:[%s2501_s2] sm:$0x7]  ;;  %v1669_v12 = vld [vmem:[%s2502_s3 + $0x84] sm:$0xf] }
  0x48   :  { %789 = vmatpush.bf16.msra.mxu0 %v1494_v56  ;;  %v1478_v9 = vor.u32 %v1694_v5, %v1477_v45  ;;  %v1469_v15 = vld [vmem:[%s2502_s3 + $0x130] sm:$0xf]  ;;  %v1692_v16 = vld [vmem:[%s2502_s3 + $0x134] sm:$0xf0]  ;;  %v1691_v17 = vld [vmem:[%s2502_s3 + $0x134] sm:$0xf] }
  0x49   :  { %803 = vmatpush.bf16.msra.mxu1 %v1370_v62  ;;  %v1485_v62 = vld [vmem:[%s2502_s3 + $0x150] sm:$0xf]  ;;  %v101_v18 = vperm.slane %v2356_v11, 0  ;;  %v1470_v19 = vor.u32 %v1692_v16, %v1469_v15  ;;  %v1471_v20 = vld [vmem:[%s2502_s3 + $0x138] sm:$0xf0]  ;;  %v103_v2 = vperm.slane %v2356_v11, 2 }
  0x4a   :  { %v1474_v22 = vor.u32 %v1691_v17, %v1471_v20  ;;  %v1461_v24 = vld [vmem:[%s2502_s3 + $0x120] sm:$0xf]  ;;  %v1690_v25 = vld [vmem:[%s2502_s3 + $0x124] sm:$0xf0]  ;;  %v1689_v26 = vld [vmem:[%s2502_s3 + $0x124] sm:$0xf] }
  0x4b   :  { %816 = vmatpush.bf16.msra.mxu2 %v1442_v14  ;;  %830 = vmatpush.bf16.msra.mxu3 %v1506_v49  ;;  %v1462_v28 = vor.u32 %v1690_v25, %v1461_v24  ;;  %v1463_v29 = vld [vmem:[%s2502_s3 + $0x128] sm:$0xf0]  ;;  %v1688_v33 = vld [vmem:[%s2502_s3 + $0x114] sm:$0xf0]  ;;  %v1687_v34 = vld [vmem:[%s2502_s3 + $0x114] sm:$0xf] }
  0x4c   :  { %v1466_v30 = vor.u32 %v1689_v26, %v1463_v29  ;;  %v1455_v38 = vld [vmem:[%s2502_s3 + $0x118] sm:$0xf0]  ;;  %v1445_v47 = vld [vmem:[%s2502_s3 + $0x100] sm:$0xf]  ;;  %v1686_v48 = vld [vmem:[%s2502_s3 + $0x104] sm:$0xf0] }
  0x4d   :  { %804 = vmatpush.bf16.msra.mxu1 %v1362_v1  ;;  %v1486_v1 = vor.u32 %v1696_v63, %v1485_v62  ;;  %v1685_v49 = vld [vmem:[%s2502_s3 + $0x104] sm:$0xf]  ;;  %v1447_v53 = vld [vmem:[%s2502_s3 + $0x108] sm:$0xf0]  ;;  %v1715_v15 = vld [vmem:[%s2504_s5 + $0x70] sm:$0xff]  ;;  %s1103_s29 = sshll.u32 %s2508_s9, 4  ;;  %s1104_s29 = int_to_ptr.hbm [resolvable:$true] %s1103_s29 }
  0x4e   :  { %v1450_v54 = vor.u32 %v1685_v49, %v1447_v53  ;;  %v1705_v16 = vld [vmem:[%s2504_s5 + $0x20] sm:$0xff]  ;;  %v1714_v17 = vld [vmem:[%s2504_s5 + $0x68] sm:$0xff]  ;;  %v1703_v20 = vld [vmem:[%s2504_s5 + $0x10] sm:$0xff]  ;;  %s1757_s30 = smov 128   ;;  %s1758_s10 = smov 8  }
  0x4f   :  { %817 = vmatpush.bf16.msra.mxu2 %v1434_v23  ;;  %831 = vmatpush.bf16.msra.mxu3 %v1498_v58  ;;  %v1701_v24 = vld [vmem:[%s2504_s5] sm:$0xff]  ;;  %v1710_v26 = vld [vmem:[%s2504_s5 + $0x48] sm:$0xff]  ;;  %v1724_v29 = vld [vmem:[%s2506_s7 + $0x38] sm:$0xff] }
  0x50   :  { %790 = vmatpush.bf16.msra.mxu0 %v1486_v1 }
  0x51   :  { %805 = vmatpush.bf16.msra.mxu1 %v1354_v3  ;;  %v1671_v3 = vld [vmem:[%s2502_s3 + $0x94] sm:$0xf] }
  0x52   :  { %v1394_v8 = vor.u32 %v1671_v3, %v1391_v4 }
  0x53   :  { %818 = vmatpush.bf16.msra.mxu2 %v1426_v32  ;;  %832 = vmatpush.bf16.msra.mxu3 %v1490_v42  ;;  %v1453_v32 = vld [vmem:[%s2502_s3 + $0x110] sm:$0xf] }
  0x54   :  { %791 = vmatpush.bf16.msra.mxu0 %v1478_v9  ;;  %v1454_v37 = vor.u32 %v1688_v33, %v1453_v32  ;;  %v1722_v32 = vld [vmem:[%s2506_s7 + $0x28] sm:$0xff]  ;;  %v514_v33 = vld [vmem:[%s2503_s4] sm:$0x3] }
  0x55   :  { %806 = vmatpush.bf16.msra.mxu1 %v1346_v13  ;;  %v1383_v13 = vld [vmem:[%s2502_s3 + $0x88] sm:$0xf0] }
  0x56   :  { %v1386_v14 = vor.u32 %v1669_v12, %v1383_v13  ;;  %v1708_v12 = vld [vmem:[%s2504_s5 + $0x38] sm:$0xff] }
  0x57   :  { %819 = vmatpush.bf16.msra.mxu2 %v1418_v41  ;;  %833 = vmatpush.bf16.msra.mxu3 %v1482_v10  ;;  %v1458_v41 = vor.u32 %v1687_v34, %v1455_v38  ;;  %v1716_v13 = vld [vmem:[%s2504_s5 + $0x78] sm:$0xff]  ;;  %v516_v34 = vperm.slane %v514_v33, 0 }
  0x58   :  { %792 = vmatpush.bf16.msra.mxu0 %v1470_v19  ;;  %v1713_v19 = vld [vmem:[%s2504_s5 + $0x60] sm:$0xff] }
  0x59   :  { %807 = vmatpush.bf16.msra.mxu1 %v1338_v21 }
  0x5b   :  { %820 = vmatpush.bf16.msra.mxu2 %v1410_v52  ;;  %834 = vmatpush.bf16.msra.mxu3 %v1474_v22  ;;  %v1446_v52 = vor.u32 %v1686_v48, %v1445_v47  ;;  %v1702_v22 = vld [vmem:[%s2504_s5 + $0x8] sm:$0xff] }
  0x5c   :  { %793 = vmatpush.bf16.msra.mxu0 %v1462_v28 }
  0x5d   :  { %808 = vmatpush.bf16.msra.mxu1 %v1330_v31  ;;  %v102_v31 = vperm.slane %v2356_v11, 1  ;;  %v1707_v11 = vld [vmem:[%s2504_s5 + $0x30] sm:$0xff] }
  0x5f   :  { %821 = vmatpush.bf16.msra.mxu2 %v1402_v61  ;;  %835 = vmatpush.bf16.msra.mxu3 %v1466_v30 }
  0x60   :  { %794 = vmatpush.bf16.msra.mxu0 %v1454_v37 }
  0x61   :  { %809 = vmatpush.bf16.msra.mxu1 %v1322_v40 }
  0x63   :  { %822 = vmatpush.bf16.msra.mxu2 %v1394_v8  ;;  %836 = vmatpush.bf16.msra.mxu3 %v1458_v41 }
  0x64   :  { %795 = vmatpush.bf16.msra.mxu0 %v1446_v52 }
  0x65   :  { %996 = vmatpush.bf16.msrb.mxu1 %v1716_v13 }
  0x67   :  { %823 = vmatpush.bf16.msra.mxu2 %v1386_v14  ;;  %837 = vmatpush.bf16.msra.mxu3 %v1450_v54  ;;  %v1706_v14 = vld [vmem:[%s2504_s5 + $0x28] sm:$0xff] }
  0x68   :  { %982 = vmatpush.bf16.msrb.mxu0 %v1708_v12 }
  0x69   :  { %997 = vmatpush.bf16.msrb.mxu1 %v1715_v15 }
  0x6c   :  { %983 = vmatpush.bf16.msrb.mxu0 %v1707_v11 }
  0x6d   :  { %998 = vmatpush.bf16.msrb.mxu1 %v1714_v17 }
  0x70   :  { %984 = vmatpush.bf16.msrb.mxu0 %v1706_v14 }
  0x71   :  { %999 = vmatpush.bf16.msrb.mxu1 %v1713_v19 }
  0x74   :  { %985 = vmatpush.bf16.msrb.mxu0 %v1705_v16  ;;  %v1729_v16 = vld [vmem:[%s2507_s8] ss:$0 sm:$0xff] }
  0xa0   :  { %v382_v21 = vpop.f32.mrf.mxu0 }
  0xa1   :  { %v383_v27 = vadd.f32 %v382_v21, %v101_v18  ;;  %v1712_v21 = vld [vmem:[%s2504_s5 + $0x58] sm:$0xff] }
  0xa2   :  { %1000 = vmatpush.bf16.msrb.mxu1 %v1712_v21 }
  0xa3   :  { %v396_v23 = vpop.f32.mrf.mxu1 }
  0xa4   :  { %v397_v35 = vadd.f32 %v396_v23, %v383_v27  ;;  %v1711_v23 = vld [vmem:[%s2504_s5 + $0x50] sm:$0xff]  ;;  %v1709_v27 = vld [vmem:[%s2504_s5 + $0x40] sm:$0xff] }
  0xa6   :  { %v457_v50 = vmax.f32 %v397_v35, 0.0  ;;  %1001 = vmatpush.bf16.msrb.mxu1 %v1711_v23 }
  0xa7   :  { %v410_v36 = vpop.f32.mrf.mxu2 }
  0xa8   :  { %v424_v39 = vpop.f32.mrf.mxu3  ;;  %v384_v40 = vpop.f32.mrf.mxu0  ;;  %v411_v46 = vadd.f32 %v410_v36, %v102_v31 }
  0xa9   :  { %v385_v43 = vadd.f32 %v384_v40, %v101_v18  ;;  %v1704_v18 = vld [vmem:[%s2504_s5 + $0x18] sm:$0xff]  ;;  %v517_v40 = vperm.slane %v514_v33, 1 }
  0xaa   :  { %v425_v56 = vadd.f32 %v424_v39, %v411_v46  ;;  %986 = vmatpush.bf16.msrb.mxu0 %v1704_v18  ;;  %1002 = vmatpush.bf16.msrb.mxu1 %v1710_v26 }
  0xab   :  { %v398_v44 = vpop.f32.mrf.mxu1 }
  0xac   :  { %v399_v51 = vadd.f32 %v398_v44, %v385_v43  ;;  %v458_v61 = vmax.f32 %v425_v56, 0.0 }
  0xae   :  { %v460_v55 = vmax.f32 %v399_v51, 0.0  ;;  %987 = vmatpush.bf16.msrb.mxu0 %v1703_v20  ;;  %1003 = vmatpush.bf16.msrb.mxu1 %v1709_v27 }
  0xaf   :  { %v412_v58 = vpop.f32.mrf.mxu2 }
  0xb0   :  { %v463_v57 = vpack.c.bf16 %v460_v55, %v457_v50  ;;  %v413_v59 = vadd.f32 %v412_v58, %v102_v31  ;;  %v426_v60 = vpop.f32.mrf.mxu3  ;;  %v1723_v31 = vld [vmem:[%s2506_s7 + $0x30] sm:$0xff] }
  0xb2   :  { %768 = vmatmul.bf16.vlgmr.msrb.gmra.mxu2 %v463_v57  ;;  %810 = vmatmul.bf16.vlgmr.msra.gmra.mxu1 %v463_v57  ;;  %v427_v62 = vadd.f32 %v426_v60, %v413_v59 }
  0xb3   :  { %988 = vmatpush.bf16.msrb.mxu0 %v1702_v22  ;;  %1081 = vmatpush.bf16.msrb.mxu2 %v1724_v29 }
  0xb4   :  { %v461_v63 = vmax.f32 %v427_v62, 0.0 }
  0xb6   :  { %v464_v0 = vpack.c.bf16 %v461_v63, %v458_v61 }
  0xb7   :  { %989 = vmatpush.bf16.msrb.mxu0 %v1701_v24  ;;  %1082 = vmatpush.bf16.msrb.mxu2 %v1723_v31 }
  0xb8   :  { %782 = vmatmul.bf16.vlgmr.msrb.gmra.mxu3 %v464_v0 }
  0xbb   :  { %1083 = vmatpush.bf16.msrb.mxu2 %v1722_v32 }
  0xc0   :  { %v438_v1 = vpop.f32.mrf.mxu0 }
  0xc1   :  { %v452_v42 = vpop.f32.mrf.mxu1  ;;  %v439_v3 = vadd.f32 %v438_v1, %v103_v2  ;;  %v1721_v1 = vld [vmem:[%s2506_s7 + $0x20] sm:$0xff] }
  0xc2   :  { %824 = vmatmul.bf16.vlgmr.msra.gmra.mxu2 %v464_v0 }
  0xc3   :  { %v453_v45 = vadd.f32 %v452_v42, %v439_v3  ;;  %1084 = vmatpush.bf16.msrb.mxu2 %v1721_v1  ;;  %v1719_v42 = vld [vmem:[%s2506_s7 + $0x10] sm:$0xff]  ;;  %v1718_v3 = vld [vmem:[%s2506_s7 + $0x8] sm:$0xff] }
  0xc5   :  { %v459_v8 = vmax.f32 %v453_v45, 0.0 }
  0xc8   :  { %v440_v4 = vpop.f32.mrf.mxu0 }
  0xc9   :  { %v441_v5 = vadd.f32 %v440_v4, %v103_v2  ;;  %v454_v6 = vpop.f32.mrf.mxu1  ;;  %v1720_v2 = vld [vmem:[%s2506_s7 + $0x18] sm:$0xff]  ;;  %v1717_v4 = vld [vmem:[%s2506_s7] sm:$0xff]  ;;  %s1756_s7 = smov [#allocation2]  }
  0xca   :  { %1085 = vmatpush.bf16.msrb.mxu2 %v1720_v2  ;;  %s1101_s27 = sshll.u32 %s1756_s7, 4  ;;  %s1102_s27 = int_to_ptr.vmem [resolvable:$true] %s1101_s27 }
  0xcb   :  { %v455_v7 = vadd.f32 %v454_v6, %v441_v5  ;;  %v1728_v6 = vld [vmem:[%s2505_s6] ss:$0 sm:$0xff] }
  0xcd   :  { %v462_v9 = vmax.f32 %v455_v7, 0.0 }
  0xce   :  { %1086 = vmatpush.bf16.msrb.mxu2 %v1719_v42 }
  0xcf   :  { %v465_v10 = vpack.c.bf16 %v462_v9, %v459_v8 }
  0xd1   :  { %796 = vmatmul.bf16.vlgmr.msra.gmra.mxu0 %v465_v10  ;;  %838 = vmatmul.bf16.vlgmr.msra.gmra.mxu3 %v465_v10 }
  0xd2   :  { %1087 = vmatpush.bf16.msrb.mxu2 %v1718_v3 }
  0xd6   :  { %1088 = vmatpush.bf16.msrb.mxu2 %v1717_v4 }
 0x12f   :  { %v811_v35 = vpop.f32.mrf.mxu1 }
 0x130   :  { %v812_v50 = vadd.f32 %v811_v35, %v517_v40 }
 0x135   :  { %v769_v25 = vpop.f32.mrf.mxu2 }
 0x136   :  { %v770_v39 = vadd.f32 %v769_v25, %v516_v34 }
 0x137   :  { %v813_v48 = vpop.f32.mrf.mxu1 }
 0x138   :  { %v814_v53 = vadd.f32 %v813_v48, %v517_v40 }
 0x13b   :  { %v783_v28 = vpop.f32.mrf.mxu3 }
 0x13c   :  { %v784_v41 = vadd.f32 %v783_v28, %v770_v39 }
 0x13d   :  { %v771_v30 = vpop.f32.mrf.mxu2 }
 0x13e   :  { %v772_v43 = vadd.f32 %v771_v30, %v516_v34 }
 0x143   :  { %v785_v36 = vpop.f32.mrf.mxu3 }
 0x144   :  { %v786_v46 = vadd.f32 %v785_v36, %v772_v43 }
 0x145   :  { %v825_v37 = vpop.f32.mrf.mxu2 }
 0x146   :  { %v826_v54 = vadd.f32 %v825_v37, %v812_v50 }
 0x14d   :  { %v827_v52 = vpop.f32.mrf.mxu2 }
 0x14e   :  { %v797_v38 = vpop.f32.mrf.mxu0  ;;  %v828_v57 = vadd.f32 %v827_v52, %v814_v53 }
 0x14f   :  { %v798_v47 = vadd.f32 %v797_v38, %v784_v41 }
 0x151   :  { %v844_v55 = vmax.f32 %v798_v47, 0.0 }
 0x154   :  { %v839_v44 = vpop.f32.mrf.mxu3 }
 0x155   :  { %v840_v58 = vadd.f32 %v839_v44, %v826_v54 }
 0x156   :  { %v799_v49 = vpop.f32.mrf.mxu0 }
 0x157   :  { %v800_v51 = vadd.f32 %v799_v49, %v786_v46  ;;  %v845_v62 = vmax.f32 %v840_v58, 0.0 }
 0x159   :  { %v846_v56 = vmax.f32 %v800_v51, 0.0 }
 0x15b   :  { %v848_v59 = vpack.c.bf16 %v846_v56, %v844_v55 }
 0x15c   :  { %v841_v60 = vpop.f32.mrf.mxu3 }
 0x15d   :  { %v842_v61 = vadd.f32 %v841_v60, %v828_v57  ;;  %990 = vmatmul.bf16.vlgmr.msrb.gmra.mxu0 %v848_v59 }
 0x15f   :  { %v847_v63 = vmax.f32 %v842_v61, 0.0 }
 0x161   :  { %v849_v0 = vpack.c.bf16 %v847_v63, %v845_v62 }
 0x163   :  { %1004 = vmatmul.bf16.vlgmr.msrb.gmra.mxu1 %v849_v0 }
 0x1da   :  { %v991_v45 = vpop.f32.mrf.mxu0 }
 0x1db   :  { %v992_v8 = vadd.f32 %v1728_v6, %v991_v45 }
 0x1e0   :  { %v1005_v5 = vpop.f32.mrf.mxu1 }
 0x1e1   :  { %v1006_v9 = vadd.f32 %v1005_v5, %v992_v8 }
 0x1e2   :  { %v993_v7 = vpop.f32.mrf.mxu0 }
 0x1e3   :  { %v994_v10 = vadd.f32 %v1728_v6, %v993_v7  ;;  %v1010_v13 = vmax.f32 %v1006_v9, 0.0 }
 0x1e8   :  { %v1007_v12 = vpop.f32.mrf.mxu1 }
 0x1e9   :  { %v1008_v11 = vadd.f32 %v1007_v12, %v994_v10 }
 0x1eb   :  { %v1011_v14 = vmax.f32 %v1008_v11, 0.0 }
 0x1ed   :  { %v1012_v15 = vpack.c.bf16 %v1011_v14, %v1010_v13 }
 0x1ef   :  { %1089 = vmatmul.bf16.vlgmr.msrb.gmra.mxu2 %v1012_v15 }
 0x272   :  { %v1090_v17 = vpop.f32.mrf.mxu2 }
 0x273   :  { %v1091_v18 = vadd.f32 %v1729_v16, %v1090_v17 }
 0x275   :  { %1095 = vst [vmem:[#allocation2] sm:$0xff] %v1091_v18 }
 0x27a   :  { %v1092_v19 = vpop.f32.mrf.mxu2 }
 0x27b   :  { %v1093_v20 = vadd.f32 %v1729_v16, %v1092_v19 }
 0x27d   :  { %1096 = vst [vmem:[#allocation2 + $0x8] sm:$0xff] %v1093_v20 }
 0x27e   :  { %1109 = dma.vmem_to_hbm [thread:$0]  %s1102_s27, 256, %s1104_s29, [#allocation3], %s1757_s30, %s1757_s30, %s1758_s10  }
 0x27f   :  { %1754 = dma.done.wait [#allocation3], 256  }
 0x280   :  { %1755 = vsyncadd [#allocation3], 4294967040 }
 0x281   :  { %1114 = vsyncpa [#allocation3], 1 }

</bundles_post_ra>
